<compile_context>
chip_gen: v5e
topology: v5e:2x2
jax: 0.10.0
libtpu: 0.0.40
codegen_flags: <defaults>
</compile_context>

<pallas_src>
import jax
import jax.numpy as jnp
from jax.experimental import pallas as pl
from jax.experimental.pallas import tpu as pltpu


def _spatial_attention_kernel(x_ref, w1_ref, b1_ref, w2_ref, b2_ref, o_ref):
    # x_ref / o_ref : (Bb, C, TILE_N) VMEM blocks (N on the lane axis).
    # w1_ref        : (Ch, C, 1) f32 VMEM  -- conv1 weight in PyTorch layout.
    # b1_ref        : (Ch,) f32 SMEM, w2_ref: (Ch,) f32 SMEM, b2_ref: (1,) f32 SMEM.
    Bb, _, TN = x_ref.shape
    Ch = w1_ref.shape[0]

    # Hoist the tiny weight/bias loads out of the per-batch loop (read once
    # per grid step, not once per batch slab).
    w1_cols = [w1_ref[j] for j in range(Ch)]          # each (C, 1) f32
    b1s = [b1_ref[j] for j in range(Ch)]
    w2s = [w2_ref[j] for j in range(Ch)]
    b2 = b2_ref[0]

    for b in range(Bb):                                # static unroll, Bb <= 8
        x_nat = x_ref[b]                               # (C, TILE_N), native dtype
        xf = x_nat.astype(jnp.float32)                 # attention path in f32

        # att = sigmoid(b2 + sum_j w2[j] * relu(b1[j] + sum_c w1[j,c] * x[c,:]))
        att = jnp.zeros((1, TN), jnp.float32) + b2
        for j in range(Ch):                            # static unroll, Ch small
            # Full-vreg multiply on (C, TILE_N); channel reduction on the XLU.
            h = jnp.sum(xf * w1_cols[j], axis=0, keepdims=True) + b1s[j]
            att = att + w2s[j] * jnp.maximum(h, 0.0)
        att = jax.nn.sigmoid(att)                      # (1, TILE_N)

        # Gate in the input dtype (no extra full-tile upcast for bf16 inputs).
        o_ref[b] = x_nat * att.astype(o_ref.dtype)


def _largest_divisor_leq(n, cap):
    cap = max(1, min(n, cap))
    for d in range(cap, 0, -1):
        if n % d == 0:
            return d
    return 1


def spatial_attention(x_ncl, conv1_w, conv1_b, conv2_w, conv2_b,
                      *, target_block_bytes=2 << 20, slab_cap_bytes=512 << 10):
    """SpatialAttention forward.

    x_ncl:   (B, C, N)       -- PyTorch Conv1d input layout
    conv1_w: (C//2, C, 1)    -- PyTorch Conv1d weight (out, in, kernel)
    conv1_b: (C//2,)
    conv2_w: (1, C//2, 1)
    conv2_b: (1,)
    """
    B, C, N = x_ncl.shape
    Ch = conv1_w.shape[0]
    dtype = x_ncl.dtype
    itemsize = jnp.dtype(dtype).itemsize

    # Weights: conv1 weight kept in genuine PyTorch (out, in, 1) layout (VMEM).
    w1 = conv1_w.astype(jnp.float32)                   # (Ch, C, 1)
    b1 = conv1_b.reshape(Ch).astype(jnp.float32)       # (Ch,)  SMEM
    w2 = conv2_w.reshape(Ch).astype(jnp.float32)       # (Ch,)  SMEM
    b2 = conv2_b.reshape(1).astype(jnp.float32)        # (1,)   SMEM

    # Pad N to a lane-dense multiple of 128 (unmasked loads/stores).
    n_pad = (-N) % 128
    x_p = jnp.pad(x_ncl, ((0, 0), (0, 0), (0, n_pad))) if n_pad else x_ncl
    Np = N + n_pad

    # --- tile selection ---
    # TILE_N: largest multiple of 128 dividing Np whose per-batch (C, TILE_N)
    # slab stays under slab_cap_bytes (keeps in-kernel f32 temporaries small).
    m = Np // 128
    k = _largest_divisor_leq(m, max(1, slab_cap_bytes // (C * 128 * itemsize)))
    tn = 128 * k
    # Bb: batches per block (static-unroll cap of 8), sized toward the block
    # byte target, while keeping >= 2 grid steps when there is enough work
    # (so both v7x TensorCores get something under "parallel" semantics).
    max_bb = max(1, min(8, target_block_bytes // (C * tn * itemsize)))
    bb = _largest_divisor_leq(B, max_bb)
    if bb > 1 and (B // bb) * (Np // tn) < 2:
        bb = _largest_divisor_leq(B, bb // 2)

    grid = (B // bb, Np // tn)

    # VMEM budget: double-buffered in + out blocks + f32 temporaries + margin.
    block_bytes = bb * C * tn * itemsize
    slab_f32 = C * tn * 4
    vmem_limit = int(min(max(4 * block_bytes + 4 * slab_f32 + (2 << 20), 16 << 20),
                         48 << 20))

    smem_spec = pl.BlockSpec(memory_space=pltpu.MemorySpace.SMEM)
    x_spec = pl.BlockSpec((bb, C, tn), lambda bi, ni: (bi, 0, ni))

    out = pl.pallas_call(
        _spatial_attention_kernel,
        out_shape=jax.ShapeDtypeStruct((B, C, Np), dtype),
        grid_spec=pltpu.PrefetchScalarGridSpec(
            num_scalar_prefetch=0,
            grid=grid,
            in_specs=[
                x_spec,                                               # x tile
                pl.BlockSpec((Ch, C, 1), lambda bi, ni: (0, 0, 0)),   # conv1 weight
                smem_spec,                                            # conv1 bias
                smem_spec,                                            # conv2 weight
                smem_spec,                                            # conv2 bias
            ],
            out_specs=x_spec,
        ),
        compiler_params=pltpu.CompilerParams(
            dimension_semantics=("parallel", "parallel"),
            vmem_limit_bytes=vmem_limit,
        ),
    )(x_p, w1, b1, w2, b2)

    return out[:, :, :N] if n_pad else out


def _reference(x_ncl, conv1_w, conv1_b, conv2_w, conv2_b):
    # Pure-JAX reference of the PyTorch forward (1x1 convs as einsums),
    # taking genuine PyTorch-layout weights.
    Ch, C, _ = conv1_w.shape
    w1 = conv1_w.reshape(Ch, C)
    w2 = conv2_w.reshape(Ch)
    h = jnp.einsum("oc,bcn->bon", w1, x_ncl) + conv1_b[None, :, None]
    h = jnp.maximum(h, 0.0)
    a = jnp.einsum("o,bon->bn", w2, h)[:, None, :] + conv2_b[None, :, None]
    a = jax.nn.sigmoid(a)                              # (B, 1, N)
    return x_ncl * a


if __name__ == "__main__":
    B, C, N = 2, 8, 1024
    Ch = C // 2

    key = jax.random.PRNGKey(0)
    kx, k1, kb1, k2, kb2 = jax.random.split(key, 5)

    x = jax.random.normal(kx, (B, C, N), dtype=jnp.float32)
    # Parameters in real PyTorch Conv1d layout: weight (out, in, 1), bias (out,).
    conv1_w = jax.random.normal(k1, (Ch, C, 1), dtype=jnp.float32) * 0.1
    conv1_b = jax.random.normal(kb1, (Ch,), dtype=jnp.float32) * 0.1
    conv2_w = jax.random.normal(k2, (1, Ch, 1), dtype=jnp.float32) * 0.1
    conv2_b = jax.random.normal(kb2, (1,), dtype=jnp.float32) * 0.1

    out = spatial_attention(x, conv1_w, conv1_b, conv2_w, conv2_b)
    out = jax.block_until_ready(out)

    ref = _reference(x, conv1_w, conv1_b, conv2_w, conv2_b)
    assert out.shape == (B, C, N)
    assert jnp.allclose(out, ref, atol=1e-5, rtol=1e-5), \
        float(jnp.max(jnp.abs(out - ref)))

    print("KERNEL_OK")
</pallas_src>

<mosaic_0001>
module attributes {stable_mosaic.version = 11 : i64} {
  func.func @_spatial_attention_kernel(%arg0: i32, %arg1: i32, %arg2: memref<1x8x1024xf32, #tpu.memory_space<vmem>>, %arg3: memref<4x8x1xf32, #tpu.memory_space<vmem>>, %arg4: memref<4xf32, #tpu.memory_space<smem>>, %arg5: memref<4xf32, #tpu.memory_space<smem>>, %arg6: memref<1xf32, #tpu.memory_space<smem>>, %arg7: memref<1x8x1024xf32, #tpu.memory_space<vmem>>) attributes {dimension_semantics = [#tpu.dimension_semantics<parallel>, #tpu.dimension_semantics<parallel>], iteration_bounds = array<i64: 2, 1>, scalar_prefetch = 0 : i64, scratch_operands = 0 : i64, tpu.core_type = #tpu.core_type<tc>, window_params = [{transform_indices = @transform_0, window_bounds = array<i64: 1, 8, 1024>}, {pipeline_mode = #tpu.pipeline_mode<synchronous>, transform_indices = @transform_1, window_bounds = array<i64: 4, 8, 1>}, {transform_indices = @transform_2, window_bounds = array<i64: 4>}, {transform_indices = @transform_3, window_bounds = array<i64: 4>}, {transform_indices = @transform_4, window_bounds = array<i64: 1>}, {transform_indices = @transform_5, window_bounds = array<i64: 1, 8, 1024>}]} {
    %c0 = arith.constant 0 : index
    %c0_0 = arith.constant 0 : index
    %c0_1 = arith.constant 0 : index
    %0 = vector.load %arg3[%c0, %c0_0, %c0_1] : memref<4x8x1xf32, #tpu.memory_space<vmem>>, vector<1x8x1xf32>
    %1 = vector.shape_cast %0 : vector<1x8x1xf32> to vector<8x1xf32>
    %c1 = arith.constant 1 : index
    %c0_2 = arith.constant 0 : index
    %c0_3 = arith.constant 0 : index
    %2 = vector.load %arg3[%c1, %c0_2, %c0_3] : memref<4x8x1xf32, #tpu.memory_space<vmem>>, vector<1x8x1xf32>
    %3 = vector.shape_cast %2 : vector<1x8x1xf32> to vector<8x1xf32>
    %c2 = arith.constant 2 : index
    %c0_4 = arith.constant 0 : index
    %c0_5 = arith.constant 0 : index
    %4 = vector.load %arg3[%c2, %c0_4, %c0_5] : memref<4x8x1xf32, #tpu.memory_space<vmem>>, vector<1x8x1xf32>
    %5 = vector.shape_cast %4 : vector<1x8x1xf32> to vector<8x1xf32>
    %c3 = arith.constant 3 : index
    %c0_6 = arith.constant 0 : index
    %c0_7 = arith.constant 0 : index
    %6 = vector.load %arg3[%c3, %c0_6, %c0_7] : memref<4x8x1xf32, #tpu.memory_space<vmem>>, vector<1x8x1xf32>
    %7 = vector.shape_cast %6 : vector<1x8x1xf32> to vector<8x1xf32>
    %c0_8 = arith.constant 0 : index
    %8 = memref.load %arg4[%c0_8] : memref<4xf32, #tpu.memory_space<smem>>
    %c1_9 = arith.constant 1 : index
    %9 = memref.load %arg4[%c1_9] : memref<4xf32, #tpu.memory_space<smem>>
    %c2_10 = arith.constant 2 : index
    %10 = memref.load %arg4[%c2_10] : memref<4xf32, #tpu.memory_space<smem>>
    %c3_11 = arith.constant 3 : index
    %11 = memref.load %arg4[%c3_11] : memref<4xf32, #tpu.memory_space<smem>>
    %c0_12 = arith.constant 0 : index
    %12 = memref.load %arg5[%c0_12] : memref<4xf32, #tpu.memory_space<smem>>
    %c1_13 = arith.constant 1 : index
    %13 = memref.load %arg5[%c1_13] : memref<4xf32, #tpu.memory_space<smem>>
    %c2_14 = arith.constant 2 : index
    %14 = memref.load %arg5[%c2_14] : memref<4xf32, #tpu.memory_space<smem>>
    %c3_15 = arith.constant 3 : index
    %15 = memref.load %arg5[%c3_15] : memref<4xf32, #tpu.memory_space<smem>>
    %c0_16 = arith.constant 0 : index
    %16 = memref.load %arg6[%c0_16] : memref<1xf32, #tpu.memory_space<smem>>
    %c0_17 = arith.constant 0 : index
    %c0_18 = arith.constant 0 : index
    %c0_19 = arith.constant 0 : index
    %17 = vector.load %arg2[%c0_17, %c0_18, %c0_19] : memref<1x8x1024xf32, #tpu.memory_space<vmem>>, vector<1x8x1024xf32>
    %18 = vector.shape_cast %17 : vector<1x8x1024xf32> to vector<8x1024xf32>
    %cst = arith.constant 0.000000e+00 : f32
    %19 = vector.broadcast %cst : f32 to vector<1x1024xf32>
    %20 = vector.broadcast %16 : f32 to vector<1x1024xf32>
    %21 = arith.addf %19, %20 : vector<1x1024xf32>
    %22 = vector.broadcast %1 : vector<8x1xf32> to vector<8x1024xf32>
    %23 = arith.mulf %18, %22 : vector<8x1024xf32>
    %cst_20 = arith.constant dense<0.000000e+00> : vector<1024xf32>
    %24 = vector.multi_reduction <add>, %23, %cst_20 [0] : vector<8x1024xf32> to vector<1024xf32>
    %25 = vector.shape_cast %24 : vector<1024xf32> to vector<1x1024xf32>
    %26 = vector.broadcast %8 : f32 to vector<1x1024xf32>
    %27 = arith.addf %25, %26 : vector<1x1024xf32>
    %cst_21 = arith.constant 0.000000e+00 : f32
    %28 = vector.broadcast %cst_21 : f32 to vector<1x1024xf32>
    %29 = arith.maximumf %27, %28 : vector<1x1024xf32>
    %30 = vector.broadcast %12 : f32 to vector<1x1024xf32>
    %31 = arith.mulf %30, %29 : vector<1x1024xf32>
    %32 = arith.addf %21, %31 : vector<1x1024xf32>
    %33 = vector.broadcast %3 : vector<8x1xf32> to vector<8x1024xf32>
    %34 = arith.mulf %18, %33 : vector<8x1024xf32>
    %cst_22 = arith.constant dense<0.000000e+00> : vector<1024xf32>
    %35 = vector.multi_reduction <add>, %34, %cst_22 [0] : vector<8x1024xf32> to vector<1024xf32>
    %36 = vector.shape_cast %35 : vector<1024xf32> to vector<1x1024xf32>
    %37 = vector.broadcast %9 : f32 to vector<1x1024xf32>
    %38 = arith.addf %36, %37 : vector<1x1024xf32>
    %cst_23 = arith.constant 0.000000e+00 : f32
    %39 = vector.broadcast %cst_23 : f32 to vector<1x1024xf32>
    %40 = arith.maximumf %38, %39 : vector<1x1024xf32>
    %41 = vector.broadcast %13 : f32 to vector<1x1024xf32>
    %42 = arith.mulf %41, %40 : vector<1x1024xf32>
    %43 = arith.addf %32, %42 : vector<1x1024xf32>
    %44 = vector.broadcast %5 : vector<8x1xf32> to vector<8x1024xf32>
    %45 = arith.mulf %18, %44 : vector<8x1024xf32>
    %cst_24 = arith.constant dense<0.000000e+00> : vector<1024xf32>
    %46 = vector.multi_reduction <add>, %45, %cst_24 [0] : vector<8x1024xf32> to vector<1024xf32>
    %47 = vector.shape_cast %46 : vector<1024xf32> to vector<1x1024xf32>
    %48 = vector.broadcast %10 : f32 to vector<1x1024xf32>
    %49 = arith.addf %47, %48 : vector<1x1024xf32>
    %cst_25 = arith.constant 0.000000e+00 : f32
    %50 = vector.broadcast %cst_25 : f32 to vector<1x1024xf32>
    %51 = arith.maximumf %49, %50 : vector<1x1024xf32>
    %52 = vector.broadcast %14 : f32 to vector<1x1024xf32>
    %53 = arith.mulf %52, %51 : vector<1x1024xf32>
    %54 = arith.addf %43, %53 : vector<1x1024xf32>
    %55 = vector.broadcast %7 : vector<8x1xf32> to vector<8x1024xf32>
    %56 = arith.mulf %18, %55 : vector<8x1024xf32>
    %cst_26 = arith.constant dense<0.000000e+00> : vector<1024xf32>
    %57 = vector.multi_reduction <add>, %56, %cst_26 [0] : vector<8x1024xf32> to vector<1024xf32>
    %58 = vector.shape_cast %57 : vector<1024xf32> to vector<1x1024xf32>
    %59 = vector.broadcast %11 : f32 to vector<1x1024xf32>
    %60 = arith.addf %58, %59 : vector<1x1024xf32>
    %cst_27 = arith.constant 0.000000e+00 : f32
    %61 = vector.broadcast %cst_27 : f32 to vector<1x1024xf32>
    %62 = arith.maximumf %60, %61 : vector<1x1024xf32>
    %63 = vector.broadcast %15 : f32 to vector<1x1024xf32>
    %64 = arith.mulf %63, %62 : vector<1x1024xf32>
    %65 = arith.addf %54, %64 : vector<1x1024xf32>
    %66 = arith.negf %65 : vector<1x1024xf32>
    %67 = math.exp %66 : vector<1x1024xf32>
    %cst_28 = arith.constant 1.000000e+00 : f32
    %68 = vector.broadcast %cst_28 : f32 to vector<1x1024xf32>
    %69 = arith.addf %68, %67 : vector<1x1024xf32>
    %70 = arith.divf %68, %69 : vector<1x1024xf32>
    %71 = vector.broadcast %70 : vector<1x1024xf32> to vector<8x1024xf32>
    %72 = arith.mulf %18, %71 : vector<8x1024xf32>
    %c0_29 = arith.constant 0 : index
    %c0_30 = arith.constant 0 : index
    %c0_31 = arith.constant 0 : index
    %73 = vector.load %arg7[%c0_29, %c0_30, %c0_31] : memref<1x8x1024xf32, #tpu.memory_space<vmem>>, vector<1x8x1024xf32>
    %74 = vector.shape_cast %73 : vector<1x8x1024xf32> to vector<8x1024xf32>
    %75 = vector.shape_cast %72 : vector<8x1024xf32> to vector<1x8x1024xf32>
    tpu.vector_store %arg7[%c0_29, %c0_30, %c0_31], %75 {strides = array<i32>} : memref<1x8x1024xf32, #tpu.memory_space<vmem>>, vector<1x8x1024xf32>,
    return
  }
  func.func @transform_0(%arg0: i32, %arg1: i32) -> (i32, i32, i32) {
    %c0_i32 = arith.constant 0 : i32
    %c0_i32_0 = arith.constant 0 : i32
    return %arg0, %c0_i32, %arg1 : i32, i32, i32
  }
  func.func @transform_1(%arg0: i32, %arg1: i32) -> (i32, i32, i32) {
    %c0_i32 = arith.constant 0 : i32
    %c0_i32_0 = arith.constant 0 : i32
    %c0_i32_1 = arith.constant 0 : i32
    %c0_i32_2 = arith.constant 0 : i32
    return %c0_i32, %c0_i32_0, %c0_i32_1 : i32, i32, i32
  }
  func.func @transform_2(%arg0: i32, %arg1: i32) -> i32 {
    %c0_i32 = arith.constant 0 : i32
    %c0_i32_0 = arith.constant 0 : i32
    return %c0_i32 : i32
  }
  func.func @transform_3(%arg0: i32, %arg1: i32) -> i32 {
    %c0_i32 = arith.constant 0 : i32
    %c0_i32_0 = arith.constant 0 : i32
    return %c0_i32 : i32
  }
  func.func @transform_4(%arg0: i32, %arg1: i32) -> i32 {
    %c0_i32 = arith.constant 0 : i32
    %c0_i32_0 = arith.constant 0 : i32
    return %c0_i32 : i32
  }
  func.func @transform_5(%arg0: i32, %arg1: i32) -> (i32, i32, i32) {
    %c0_i32 = arith.constant 0 : i32
    %c0_i32_0 = arith.constant 0 : i32
    return %arg0, %c0_i32, %arg1 : i32, i32, i32
  }
}

</mosaic_0001>

<bundles_post_ra>
// kernel: tpu_custom_call.1
= control target key start
LH: loop header
LB: loop body
LE: loop exit
PB: predicated region body
PF: predicated region fallthrough
CT: control target
= control target key end

     0   :  { %s1958_s0 = inlined_call_operand.hbm [shape: f32[2,8,1024], index: 0, kind: input, shape index: {}]   ;;  %s1959_s1 = inlined_call_operand.vmem [shape: f32[4,8,1], index: 1, kind: input, shape index: {}]   ;;  %s1960_s2 = inlined_call_operand.vmem [shape: f32[4], index: 2, kind: input, shape index: {}]   ;;  %s1961_s3 = inlined_call_operand.vmem [shape: f32[4], index: 3, kind: input, shape index: {}]   ;;  %s1962_s4 = inlined_call_operand.<no memory space> [shape: f32[1], index: 4, kind: input, shape index: {}]   ;;  %s1963_s5 = inlined_call_operand.hbm [shape: f32[2,8,1024], index: 5, kind: output, shape index: {}]  }
   0x1   :  { %10 = sst [smem:[#allocation2]] %s1962_s4 }
   0x2   :  { %11 = vsyncpa [#allocation4], 0 }
   0x3   :  { %13 = vsyncpa [#allocation4 + $0x1], 0 }
   0x4   :  { %14 = vsyncpa [#allocation6], 0 }
   0x5   :  { %15 = vsyncpa [#allocation9], 0 }
   0x6   :  { %16 = vsyncpa [#allocation5], 0 }
   0x7   :  { %18 = vsyncpa [#allocation5 + $0x1], 0  ;;  %s1342_s20 = smov 0   ;;  %s1344_s21 = smov 0  }
   0x8   :  { %s1346_s22 = smov 0   ;;  %s1348_s23 = smov 0  }
   0x9   :  { %s1350_s24 = smov 0   ;;  %s1352_s25 = smov 0  }
   0xa LB: > { %s990_s4 = sadd.s32 4294967295, %s1304_s25   ;;  %s991_s26 = sadd.s32 4294967294, %s1304_s25   ;;  %s1304_s25 = sphi %s1352_s25, %s24_s25   ;;  %s1300_s24 = sphi %s1350_s24, %s1991_s24   ;;  %s1296_s23 = sphi %s1348_s23, %s1990_s23   ;;  %s1292_s22 = sphi %s1346_s22, %s1989_s22   ;;  %s1288_s21 = sphi %s1344_s21, %s1988_s21   ;;  %s1284_s20 = sphi %s1342_s20, %s1987_s20  }
   0xb   : > { %p58_p0 = scmp.ne.s32.totalorder %s1288_s21, %s1284_s20  ;;  %p1376_p1 = scmp.eq.s32.totalorder %s990_s4, 0 }
   0xc   : > { %p174_p2 = scmp.eq.s32.totalorder %s991_s26, 1  ;;  %p992_p4 = scmp.ge.s32.totalorder %s1304_s25, 1 }
   0xd   : > { %p1382_p3 = por %p1376_p1, %p58_p0  ;;  %p181_p6 = scmp.lt.s32.totalorder %s1304_s25, 3 }
   0xe   : > { %p1387_p5 = por %p174_p2, %p58_p0  ;;  %s196_s7 = sshll.u32 %s1960_s2, 4  ;;  %s197_s7 = int_to_ptr.vmem [resolvable:$true] %s196_s7 }
   0xf   : > { %p1395_p7 = pnand %p992_p4, %p181_p6  ;;  %p995_p8 = scmp.ge.s32.totalorder %s1304_s25, 2 }
  0x10   : > { %s206_s11 = sshll.u32 %s1961_s3, 4  ;;  %s1306_s12 = smov [#allocation7]   ;;  %s207_s11 = int_to_ptr.vmem [resolvable:$true] %s206_s11 }
  0x11   : > { %p1040_p9 = pneg %p1395_p7  ;;  %s1307_s13 = smov [#allocation8]  }
  0x12   : > { %p168_p11 = scmp.eq.s32.totalorder %s990_s4, 1  ;;  %s36_s14 = sadd.s32 1, %s1300_s24 }
  0x13   : > { %p1041_p10 = pnand %p1040_p9, %p1376_p1  ;;  %p38_p12 = scmp.ge.s32.totalorder %s36_s14, 2 }
  0x14   : > { %s45_s15 = sadd.s32 1, %s1292_s22  ;;  %p52_p13 = scmp.ne.s32.totalorder %s1292_s22, %s1288_s21 }
  0x15   : > { %1043 = dma.vmem_to_smem (!%p1041_p10), %s197_s7, 16, %s1306_s12, [#allocation6]  }
  0x16   : > { %1046 = dma.vmem_to_smem (!%p1041_p10), %s207_s11, 16, %s1307_s13, [#allocation9]  }
  0x17   : > { %p53_p0 = scmp.eq.s32.totalorder %s1304_s25, 0  ;;  %s1993_s14 = smov (%p38_p12, %s36_s14), 0 }
  0x18   : > { %p1414_p2 = por %p168_p11, %p52_p13  ;;  %p1057_p4 = scmp.lt.s32.totalorder %s1304_s25, 2 }
  0x19   : > { %s40_s17 = ssub.s32 %s1300_s24, %s1993_s14  ;;  %s220_s18 = sand.u32 1, %s1292_s22  }
  0x1a   : > { %p43_p6 = scmp.eq.s32.totalorder %s40_s17, 0  ;;  %p54_p9 = por %p53_p0, %p52_p13 }
  0x1b   : > { %s996_s19 = sshll.u32 %s220_s18, 6  ;;  %s1026_s4 = sshll.u32 %s1300_s24, 6 }
  0x1c   : > { %s1424_s26 = scalar_select %p43_p6, %s1292_s22, %s45_s15  }
  0x1d   : > { %s231_s7 = scalar_lea.hbm %s1958_s0, %s1026_s4  ;;  %s224_s10 = scalar_lea.vmem [#allocation3], %s996_s19 }
  0x1e   : > { %s233_s9 = sshll.u32 %s231_s7, 4  ;;  %s235_s11 = sshll.u32 %s224_s10, 4  ;;  %s234_s9 = int_to_ptr.hbm [resolvable:$true] %s233_s9  ;;  %s236_s11 = int_to_ptr.vmem [resolvable:$true] %s235_s11 }
  0x1f   : > { %p1048_p10 = pnand %p1057_p4, %p54_p9  ;;  %s221_s12 = scalar_lea.sflag [#allocation4], %s220_s18 }
  0x20   : > { %244 = sbr.rel (%p1395_p7) target bundleno = 297 (0x129), region = 40  ;;  %s1434_s13 = sand.u32 (!%p1395_p7), 1, %s1288_s21  }
  0x21   : > { %1050 = dma.hbm_to_vmem [thread:$0]  (!%p1048_p10), %s234_s9, 1024, %s236_s11, %s221_s12  }
  0x22   : > { %s1000_s15 = sshll.u32 (!%p1395_p7), %s1434_s13, 6  ;;  %s247_s17 = scalar_lea.sflag (!%p1395_p7), [#allocation4], %s1434_s13 }
  0x23   : > { %s1440_s19 = scalar_lea.vmem (!%p1395_p7), [#allocation3], %s1000_s15 }
  0x25   : > { %1267 = dma.done.wait (%p1382_p3), %s247_s17, 1024  }
  0x26   : > { %1269 = vsyncadd (%p1382_p3), %s247_s17, 4294966272 }
  0x27   : > { %1271 = dma.done.wait (%p1376_p1), [#allocation6], 16  }
  0x28   : > { %1273 = vsyncadd (%p1376_p1), [#allocation6], 4294967280 }
  0x29   : > { %1275 = dma.done.wait (%p1376_p1), [#allocation9], 16  }
  0x2a   : > { %1277 = vsyncadd (%p1376_p1), [#allocation9], 4294967280 }
  0x2b   : > { %266 = sfence }
  0x2c   : > { %v1005_v0 = vld [vmem:[%s1959_s1 + $0x10] sm:$0xff]  ;;  %v291_v1 = vld [vmem:[%s1959_s1] sm:$0xff]  ;;  %v1308_v2 = vmov 0   ;;  %v1006_v3 = vld [vmem:[%s1959_s1 + $0x18] sm:$0xff]  ;;  %s1008_s9 = sld [smem:[#allocation7 + $0x2]]  ;;  %s1027_s27 = sshll.u32 %s1296_s23, 6 }
  0x2d   : > { %1113 = vset.pattern.permute.xlu1 %v1308_v2  ;;  %1112 = vset.pattern.permute.xlu0 %v1308_v2  ;;  %v1004_v4 = vld [vmem:[%s1959_s1 + $0x8] sm:$0xff]  ;;  %s1011_s10 = sld [smem:[#allocation8 + $0x2]]  ;;  %v1467_v5 = vld [vmem:[%s1440_s19] sm:$0xff]  ;;  %v1473_v7 = vld [vmem:[%s1440_s19 + $0x10] sm:$0xff]  ;;  %s1905_s6 = scalar_lea.hbm %s1963_s5, %s1027_s27 }
  0x2e   : > { %509 = vperm.xlu1 %1113, %v1005_v0   ;;  %319 = vperm.xlu0 %1112, %v291_v1   ;;  %s298_s11 = sld [smem:[#allocation7]]  ;;  %v1470_v6 = vld [vmem:[%s1440_s19 + $0x8] sm:$0xff]  ;;  %v1476_v8 = vld [vmem:[%s1440_s19 + $0x18] sm:$0xff]  ;;  %v1479_v9 = vld [vmem:[%s1440_s19 + $0x20] sm:$0xff]  ;;  %s288_s7 = scalar_lea.vmem [#allocation10], %s1000_s15 }
  0x2f   : > { %v1482_v10 = vld [vmem:[%s1440_s19 + $0x28] sm:$0xff]  ;;  %v1485_v11 = vld [vmem:[%s1440_s19 + $0x30] sm:$0xff]  ;;  %v1488_v12 = vld [vmem:[%s1440_s19 + $0x38] sm:$0xff]  ;;  %s1504_s12 = sld [smem:[#allocation8]]  ;;  %s883_s15 = sshll.u32 %s1905_s6, 4  ;;  %s884_s15 = int_to_ptr.hbm [resolvable:$true] %s883_s15 }
  0x30   : > { %s1549_s17 = sld [smem:[#allocation7 + $0x3]] }
  0x31   : > { %s1551_s8 = sld [smem:[#allocation8 + $0x3]] }
  0x32   : > { %v1490_v13 = vstv %s1008_s9  ;;  %s1604_s18 = sld [smem:[#allocation2]]  ;;  %s881_s9 = sshll.u32 %s288_s7, 4  ;;  %s882_s9 = int_to_ptr.vmem [resolvable:$true] %s881_s9 }
  0x33   : > { %v1492_v14 = vstv %s1011_s10  ;;  %s1606_s28 = sld [smem:[#allocation7 + $0x1]]  ;;  %s866_s10 = scalar_lea.sflag [#allocation5], %s1434_s13 }
  0x34   : > { %v1494_v16 = vstv %s298_s11  ;;  %s1010_s4 = sld [smem:[#allocation8 + $0x1]]  ;;  %s1228_s11 = sshra.s32 %s884_s15, 4  ;;  %s1229_s11 = int_to_ptr.hbm [resolvable:$true] %s1228_s11 }
  0x35   : > { %p1235_p11 = scmp.lt.s32.totalorder %s1229_s11, %s1963_s5 }
  0x36   : > { %604 = vperm.xlu1 %1113, %v1006_v3   ;;  %414 = vperm.xlu0 %1112, %v1004_v4  }
  0xa0   : > { %v510_v15 = vpop.permute.xlu1 %509 }
  0xa1   : > { %v512_v17 = vmul.f32 %v510_v15, %v1467_v5  ;;  %v513_v18 = vmul.f32 %v510_v15, %v1470_v6  ;;  %v514_v19 = vmul.f32 %v510_v15, %v1473_v7  ;;  %v515_v20 = vmul.f32 %v510_v15, %v1476_v8 }
  0xa2   : > { %v516_v21 = vmul.f32 %v510_v15, %v1479_v9  ;;  %v517_v22 = vmul.f32 %v510_v15, %v1482_v10  ;;  %v518_v23 = vmul.f32 %v510_v15, %v1485_v11  ;;  %v519_v24 = vmul.f32 %v510_v15, %v1488_v12 }
  0xa3   : > { %v520_v25 = vrot.slane %v512_v17, 4  ;;  %v526_v26 = vrot.slane %v513_v18, 4  ;;  %v532_v27 = vrot.slane %v514_v19, 4  ;;  %v538_v28 = vrot.slane %v515_v20, 4 }
  0xa4   : > { %v544_v29 = vrot.slane %v516_v21, 4  ;;  %v550_v30 = vrot.slane %v517_v22, 4  ;;  %v556_v31 = vrot.slane %v518_v23, 4  ;;  %v562_v32 = vrot.slane %v519_v24, 4 }
  0xa5   : > { %v521_v33 = vadd.f32 %v520_v25, %v512_v17  ;;  %v527_v34 = vadd.f32 %v526_v26, %v513_v18  ;;  %v533_v35 = vadd.f32 %v532_v27, %v514_v19  ;;  %v539_v36 = vadd.f32 %v538_v28, %v515_v20 }
  0xa6   : > { %v545_v37 = vadd.f32 %v544_v29, %v516_v21  ;;  %v551_v38 = vadd.f32 %v550_v30, %v517_v22  ;;  %v557_v39 = vadd.f32 %v556_v31, %v518_v23  ;;  %v563_v40 = vadd.f32 %v562_v32, %v519_v24 }
  0xa7   : > { %v522_v41 = vrot.slane %v521_v33, 2  ;;  %v528_v42 = vrot.slane %v527_v34, 2  ;;  %v534_v43 = vrot.slane %v533_v35, 2  ;;  %v540_v44 = vrot.slane %v539_v36, 2 }
  0xa8   : > { %v546_v45 = vrot.slane %v545_v37, 2  ;;  %v552_v46 = vrot.slane %v551_v38, 2  ;;  %v558_v47 = vrot.slane %v557_v39, 2  ;;  %v564_v48 = vrot.slane %v563_v40, 2 }
  0xa9   : > { %v523_v49 = vadd.f32 %v522_v41, %v521_v33  ;;  %v529_v50 = vadd.f32 %v528_v42, %v527_v34  ;;  %v535_v51 = vadd.f32 %v534_v43, %v533_v35  ;;  %v541_v52 = vadd.f32 %v540_v44, %v539_v36  ;;  %v320_v36 = vpop.permute.xlu0 %319 }
  0xaa   : > { %v547_v53 = vadd.f32 %v546_v45, %v545_v37  ;;  %v553_v54 = vadd.f32 %v552_v46, %v551_v38  ;;  %v559_v55 = vadd.f32 %v558_v47, %v557_v39  ;;  %v565_v56 = vadd.f32 %v564_v48, %v563_v40 }
  0xab   : > { %v524_v57 = vrot.slane %v523_v49, 1  ;;  %v530_v58 = vrot.slane %v529_v50, 1  ;;  %v536_v59 = vrot.slane %v535_v51, 1  ;;  %v542_v60 = vrot.slane %v541_v52, 1 }
  0xac   : > { %v548_v61 = vrot.slane %v547_v53, 1  ;;  %v554_v62 = vrot.slane %v553_v54, 1  ;;  %v560_v63 = vrot.slane %v559_v55, 1  ;;  %v566_v0 = vrot.slane %v565_v56, 1 }
  0xad   : > { %v525_v1 = vadd.f32 %v524_v57, %v523_v49  ;;  %v531_v2 = vadd.f32 %v530_v58, %v529_v50  ;;  %v537_v3 = vadd.f32 %v536_v59, %v535_v51  ;;  %v543_v4 = vadd.f32 %v542_v60, %v541_v52 }
  0xae   : > { %v549_v15 = vadd.f32 %v548_v61, %v547_v53  ;;  %v555_v17 = vadd.f32 %v554_v62, %v553_v54  ;;  %v561_v18 = vadd.f32 %v560_v63, %v559_v55  ;;  %v567_v19 = vadd.f32 %v566_v0, %v565_v56 }
  0xaf   : > { %v569_v20 = vadd.f32 %v1490_v13, %v525_v1  ;;  %v570_v21 = vadd.f32 %v1490_v13, %v531_v2  ;;  %v571_v22 = vadd.f32 %v1490_v13, %v537_v3  ;;  %v572_v23 = vadd.f32 %v1490_v13, %v543_v4 }
  0xb0   : > { %v573_v24 = vadd.f32 %v1490_v13, %v549_v15  ;;  %v574_v25 = vadd.f32 %v1490_v13, %v555_v17  ;;  %v575_v26 = vadd.f32 %v1490_v13, %v561_v18  ;;  %v1514_v27 = vadd.f32 %v1490_v13, %v567_v19 }
  0xb1   : > { %v577_v28 = vmax.f32 %v569_v20, 0.0  ;;  %v578_v29 = vmax.f32 %v570_v21, 0.0  ;;  %v579_v30 = vmax.f32 %v571_v22, 0.0  ;;  %v580_v31 = vmax.f32 %v572_v23, 0.0 }
  0xb2   : > { %v581_v32 = vmax.f32 %v573_v24, 0.0  ;;  %v582_v33 = vmax.f32 %v574_v25, 0.0  ;;  %v583_v34 = vmax.f32 %v575_v26, 0.0  ;;  %v1517_v35 = vstv %s1504_s12  ;;  %s1230_s12 = scalar_lea.hbm %s1229_s11, 64 }
  0xb3   : > { %v584_v37 = vmax.f32 %v1514_v27, 0.0  ;;  %v1521_v38 = vmul.f32 %v1492_v14, %v577_v28  ;;  %v1524_v39 = vmul.f32 %v1492_v14, %v578_v29  ;;  %v1527_v13 = vmul.f32 %v1492_v14, %v579_v30  ;;  %p1231_p1 = scmp.ne.s32.totalorder %s1229_s11, %s1230_s12 }
  0xb4   : > { %v1530_v40 = vmul.f32 %v1492_v14, %v580_v31  ;;  %v1533_v41 = vmul.f32 %v1492_v14, %v581_v32  ;;  %v1536_v42 = vmul.f32 %v1492_v14, %v582_v33  ;;  %v1539_v43 = vmul.f32 %v1492_v14, %v583_v34 }
  0xb5   : > { %v322_v44 = vmul.f32 %v320_v36, %v1467_v5  ;;  %v323_v45 = vmul.f32 %v320_v36, %v1470_v6  ;;  %v324_v46 = vmul.f32 %v320_v36, %v1473_v7  ;;  %v325_v47 = vmul.f32 %v320_v36, %v1476_v8  ;;  %p1232_p3 = pnand %p1231_p1, %p1414_p2 }
  0xb6   : > { %v326_v48 = vmul.f32 %v320_v36, %v1479_v9  ;;  %v327_v49 = vmul.f32 %v320_v36, %v1482_v10  ;;  %v328_v50 = vmul.f32 %v320_v36, %v1485_v11  ;;  %v329_v51 = vmul.f32 %v320_v36, %v1488_v12 }
  0xb7   : > { %v330_v52 = vrot.slane %v322_v44, 4  ;;  %v336_v53 = vrot.slane %v323_v45, 4  ;;  %v342_v54 = vrot.slane %v324_v46, 4  ;;  %v348_v55 = vrot.slane %v325_v47, 4  ;;  %p1233_p7 = pneg %p1232_p3 }
  0xb8   : > { %v354_v56 = vrot.slane %v326_v48, 4  ;;  %v360_v57 = vrot.slane %v327_v49, 4  ;;  %v366_v58 = vrot.slane %v328_v50, 4  ;;  %v372_v59 = vrot.slane %v329_v51, 4 }
  0xb9   : > { %v331_v60 = vadd.f32 %v330_v52, %v322_v44  ;;  %v337_v61 = vadd.f32 %v336_v53, %v323_v45  ;;  %v343_v62 = vadd.f32 %v342_v54, %v324_v46  ;;  %v349_v63 = vadd.f32 %v348_v55, %v325_v47 }
  0xba   : > { %v355_v0 = vadd.f32 %v354_v56, %v326_v48  ;;  %v361_v1 = vadd.f32 %v360_v57, %v327_v49  ;;  %v367_v2 = vadd.f32 %v366_v58, %v328_v50  ;;  %v373_v3 = vadd.f32 %v372_v59, %v329_v51 }
  0xbb   : > { %v332_v4 = vrot.slane %v331_v60, 2  ;;  %v338_v15 = vrot.slane %v337_v61, 2  ;;  %v344_v17 = vrot.slane %v343_v62, 2  ;;  %v350_v18 = vrot.slane %v349_v63, 2 }
  0xbc   : > { %v356_v19 = vrot.slane %v355_v0, 2  ;;  %v362_v20 = vrot.slane %v361_v1, 2  ;;  %v368_v21 = vrot.slane %v367_v2, 2  ;;  %v374_v22 = vrot.slane %v373_v3, 2 }
  0xbd   : > { %v333_v23 = vadd.f32 %v332_v4, %v331_v60  ;;  %v339_v24 = vadd.f32 %v338_v15, %v337_v61  ;;  %v345_v25 = vadd.f32 %v344_v17, %v343_v62  ;;  %v351_v26 = vadd.f32 %v350_v18, %v349_v63 }
  0xbe   : > { %v357_v28 = vadd.f32 %v356_v19, %v355_v0  ;;  %v363_v29 = vadd.f32 %v362_v20, %v361_v1  ;;  %v369_v30 = vadd.f32 %v368_v21, %v367_v2  ;;  %v375_v31 = vadd.f32 %v374_v22, %v373_v3  ;;  %v605_v19 = vpop.permute.xlu1 %604 }
  0xbf   : > { %v334_v32 = vrot.slane %v333_v23, 1  ;;  %v340_v33 = vrot.slane %v339_v24, 1  ;;  %v346_v34 = vrot.slane %v345_v25, 1  ;;  %v352_v36 = vrot.slane %v351_v26, 1 }
  0xc0   : > { %v358_v44 = vrot.slane %v357_v28, 1  ;;  %v364_v45 = vrot.slane %v363_v29, 1  ;;  %v370_v46 = vrot.slane %v369_v30, 1  ;;  %v376_v47 = vrot.slane %v375_v31, 1 }
  0xc1   : > { %v335_v48 = vadd.f32 %v334_v32, %v333_v23  ;;  %v341_v49 = vadd.f32 %v340_v33, %v339_v24  ;;  %v347_v50 = vadd.f32 %v346_v34, %v345_v25  ;;  %v353_v51 = vadd.f32 %v352_v36, %v351_v26 }
  0xc2   : > { %v359_v52 = vadd.f32 %v358_v44, %v357_v28  ;;  %v365_v53 = vadd.f32 %v364_v45, %v363_v29  ;;  %v371_v54 = vadd.f32 %v370_v46, %v369_v30  ;;  %v377_v55 = vadd.f32 %v376_v47, %v375_v31 }
  0xc3   : > { %v379_v56 = vadd.f32 %v1494_v16, %v335_v48  ;;  %v380_v57 = vadd.f32 %v1494_v16, %v341_v49  ;;  %v381_v58 = vadd.f32 %v1494_v16, %v347_v50  ;;  %v382_v59 = vadd.f32 %v1494_v16, %v353_v51 }
  0xc4   : > { %v383_v60 = vadd.f32 %v1494_v16, %v359_v52  ;;  %v384_v61 = vadd.f32 %v1494_v16, %v365_v53  ;;  %v385_v62 = vadd.f32 %v1494_v16, %v371_v54  ;;  %v1561_v63 = vadd.f32 %v1494_v16, %v377_v55 }
  0xc5   : > { %v387_v0 = vmax.f32 %v379_v56, 0.0  ;;  %v388_v1 = vmax.f32 %v380_v57, 0.0  ;;  %v389_v2 = vmax.f32 %v381_v58, 0.0  ;;  %v390_v3 = vmax.f32 %v382_v59, 0.0 }
  0xc6   : > { %v1566_v4 = vmul.f32 %v1492_v14, %v584_v37  ;;  %v391_v15 = vmax.f32 %v383_v60, 0.0  ;;  %v392_v17 = vmax.f32 %v384_v61, 0.0  ;;  %v393_v18 = vmax.f32 %v385_v62, 0.0 }
  0xc7   : > { %v394_v20 = vmax.f32 %v1561_v63, 0.0  ;;  %v1570_v16 = vmul.f32 %v1517_v35, %v387_v0  ;;  %v1573_v21 = vmul.f32 %v1517_v35, %v388_v1  ;;  %v1576_v22 = vmul.f32 %v1517_v35, %v389_v2 }
  0xc8   : > { %v1579_v27 = vmul.f32 %v1517_v35, %v390_v3  ;;  %v1582_v14 = vmul.f32 %v1517_v35, %v391_v15  ;;  %v1585_v37 = vmul.f32 %v1517_v35, %v392_v17  ;;  %v1588_v23 = vmul.f32 %v1517_v35, %v393_v18 }
  0xc9   : > { %v1591_v24 = vstv %s1549_s17  ;;  %v1594_v25 = vstv %s1551_s8  ;;  %v607_v26 = vmul.f32 %v605_v19, %v1467_v5  ;;  %v608_v28 = vmul.f32 %v605_v19, %v1470_v6 }
  0xca   : > { %v609_v29 = vmul.f32 %v605_v19, %v1473_v7  ;;  %v610_v30 = vmul.f32 %v605_v19, %v1476_v8  ;;  %v611_v31 = vmul.f32 %v605_v19, %v1479_v9  ;;  %v612_v32 = vmul.f32 %v605_v19, %v1482_v10 }
  0xcb   : > { %v613_v33 = vmul.f32 %v605_v19, %v1485_v11  ;;  %v614_v34 = vmul.f32 %v605_v19, %v1488_v12  ;;  %v615_v36 = vrot.slane %v607_v26, 4  ;;  %v621_v44 = vrot.slane %v608_v28, 4 }
  0xcc   : > { %v627_v45 = vrot.slane %v609_v29, 4  ;;  %v633_v46 = vrot.slane %v610_v30, 4  ;;  %v639_v47 = vrot.slane %v611_v31, 4  ;;  %v645_v48 = vrot.slane %v612_v32, 4 }
  0xcd   : > { %v616_v49 = vadd.f32 %v615_v36, %v607_v26  ;;  %v622_v50 = vadd.f32 %v621_v44, %v608_v28  ;;  %v651_v51 = vrot.slane %v613_v33, 4  ;;  %v657_v52 = vrot.slane %v614_v34, 4 }
  0xce   : > { %v628_v53 = vadd.f32 %v627_v45, %v609_v29  ;;  %v634_v54 = vadd.f32 %v633_v46, %v610_v30  ;;  %v640_v55 = vadd.f32 %v639_v47, %v611_v31  ;;  %v646_v56 = vadd.f32 %v645_v48, %v612_v32 }
  0xcf   : > { %v617_v57 = vrot.slane %v616_v49, 2  ;;  %v623_v58 = vrot.slane %v622_v50, 2  ;;  %v652_v59 = vadd.f32 %v651_v51, %v613_v33  ;;  %v658_v60 = vadd.f32 %v657_v52, %v614_v34 }
  0xd0   : > { %v629_v61 = vrot.slane %v628_v53, 2  ;;  %v635_v62 = vrot.slane %v634_v54, 2  ;;  %v641_v0 = vrot.slane %v640_v55, 2  ;;  %v647_v1 = vrot.slane %v646_v56, 2 }
  0xd1   : > { %v618_v2 = vadd.f32 %v617_v57, %v616_v49  ;;  %v624_v3 = vadd.f32 %v623_v58, %v622_v50  ;;  %v653_v15 = vrot.slane %v652_v59, 2  ;;  %v659_v17 = vrot.slane %v658_v60, 2 }
  0xd2   : > { %v630_v18 = vadd.f32 %v629_v61, %v628_v53  ;;  %v636_v19 = vadd.f32 %v635_v62, %v634_v54  ;;  %v642_v26 = vadd.f32 %v641_v0, %v640_v55  ;;  %v648_v28 = vadd.f32 %v647_v1, %v646_v56 }
  0xd3   : > { %v619_v29 = vrot.slane %v618_v2, 1  ;;  %v625_v30 = vrot.slane %v624_v3, 1  ;;  %v654_v31 = vadd.f32 %v653_v15, %v652_v59  ;;  %v660_v32 = vadd.f32 %v659_v17, %v658_v60 }
  0xd4   : > { %v631_v36 = vrot.slane %v630_v18, 1  ;;  %v637_v44 = vrot.slane %v636_v19, 1  ;;  %v643_v33 = vrot.slane %v642_v26, 1  ;;  %v649_v34 = vrot.slane %v648_v28, 1 }
  0xd5   : > { %v620_v45 = vadd.f32 %v619_v29, %v618_v2  ;;  %v626_v46 = vadd.f32 %v625_v30, %v624_v3  ;;  %v655_v47 = vrot.slane %v654_v31, 1  ;;  %v661_v48 = vrot.slane %v660_v32, 1 }
  0xd6   : > { %v632_v49 = vadd.f32 %v631_v36, %v630_v18  ;;  %v638_v50 = vadd.f32 %v637_v44, %v636_v19  ;;  %v644_v51 = vadd.f32 %v643_v33, %v642_v26  ;;  %v650_v52 = vadd.f32 %v649_v34, %v648_v28  ;;  %v415_v36 = vpop.permute.xlu0 %414 }
  0xd7   : > { %v656_v53 = vadd.f32 %v655_v47, %v654_v31  ;;  %v662_v54 = vadd.f32 %v661_v48, %v660_v32  ;;  %v664_v55 = vadd.f32 %v1591_v24, %v620_v45  ;;  %v665_v56 = vadd.f32 %v1591_v24, %v626_v46 }
  0xd8   : > { %v666_v57 = vadd.f32 %v1591_v24, %v632_v49  ;;  %v667_v58 = vadd.f32 %v1591_v24, %v638_v50  ;;  %v668_v59 = vadd.f32 %v1591_v24, %v644_v51  ;;  %v669_v60 = vadd.f32 %v1591_v24, %v650_v52 }
  0xd9   : > { %v670_v61 = vadd.f32 %v1591_v24, %v656_v53  ;;  %v1616_v62 = vadd.f32 %v1591_v24, %v662_v54  ;;  %v672_v0 = vmax.f32 %v664_v55, 0.0  ;;  %v673_v1 = vmax.f32 %v665_v56, 0.0 }
  0xda   : > { %v674_v2 = vmax.f32 %v666_v57, 0.0  ;;  %v675_v3 = vmax.f32 %v667_v58, 0.0  ;;  %v676_v15 = vmax.f32 %v668_v59, 0.0  ;;  %v677_v17 = vmax.f32 %v669_v60, 0.0 }
  0xdb   : > { %v403_v18 = vmul.f32 %v1517_v35, %v394_v20  ;;  %v678_v19 = vmax.f32 %v670_v61, 0.0  ;;  %v679_v26 = vmax.f32 %v1616_v62, 0.0  ;;  %v1623_v28 = vmul.f32 %v1594_v25, %v672_v0 }
  0xdc   : > { %v1626_v24 = vmul.f32 %v1594_v25, %v673_v1  ;;  %v1629_v29 = vmul.f32 %v1594_v25, %v674_v2  ;;  %v1632_v30 = vmul.f32 %v1594_v25, %v675_v3  ;;  %v1635_v31 = vmul.f32 %v1594_v25, %v676_v15 }
  0xdd   : > { %v1638_v35 = vmul.f32 %v1594_v25, %v677_v17  ;;  %v1641_v63 = vmul.f32 %v1594_v25, %v678_v19  ;;  %v315_v20 = vstv %s1604_s18  ;;  %v1645_v32 = vstv %s1606_s28  ;;  %s1234_s18 = scalar_lea.hbm %s1963_s5, 128 }
  0xde   : > { %v1648_v44 = vadd.f32 %v1570_v16, %v315_v20  ;;  %v1651_v33 = vadd.f32 %v1573_v21, %v315_v20  ;;  %v1654_v34 = vadd.f32 %v1576_v22, %v315_v20  ;;  %v1657_v45 = vadd.f32 %v1579_v27, %v315_v20  ;;  %p1236_p12 = scmp.lt.s32.totalorder %s1234_s18, %s1230_s12 }
  0xdf   : > { %v1660_v46 = vadd.f32 %v1582_v14, %v315_v20  ;;  %v1663_v47 = vadd.f32 %v1585_v37, %v315_v20  ;;  %v1666_v48 = vadd.f32 %v1588_v23, %v315_v20  ;;  %v1668_v16 = vadd.f32 %v403_v18, %v315_v20 }
  0xe0   : > { %v1670_v49 = vstv %s1010_s4  ;;  %v417_v21 = vmul.f32 %v415_v36, %v1467_v5  ;;  %v418_v22 = vmul.f32 %v415_v36, %v1470_v6  ;;  %v419_v27 = vmul.f32 %v415_v36, %v1473_v7  ;;  %p1237_p13 = por %p1236_p12, %p1235_p11 }
  0xe1   : > { %v420_v50 = vmul.f32 %v415_v36, %v1476_v8  ;;  %v421_v14 = vmul.f32 %v415_v36, %v1479_v9  ;;  %v422_v37 = vmul.f32 %v415_v36, %v1482_v10  ;;  %v423_v51 = vmul.f32 %v415_v36, %v1485_v11 }
  0xe2   : > { %v424_v23 = vmul.f32 %v415_v36, %v1488_v12  ;;  %v425_v52 = vrot.slane %v417_v21, 4  ;;  %v431_v53 = vrot.slane %v418_v22, 4  ;;  %v437_v54 = vrot.slane %v419_v27, 4  ;;  %p1238_p0 = pnand %p1237_p13, %p1233_p7 }
  0xe3   : > { %v443_v55 = vrot.slane %v420_v50, 4  ;;  %v449_v56 = vrot.slane %v421_v14, 4  ;;  %v455_v5 = vrot.slane %v422_v37, 4  ;;  %v461_v57 = vrot.slane %v423_v51, 4 }
  0xe4   : > { %v426_v6 = vadd.f32 %v425_v52, %v417_v21  ;;  %v432_v58 = vadd.f32 %v431_v53, %v418_v22  ;;  %v438_v7 = vadd.f32 %v437_v54, %v419_v27  ;;  %v467_v59 = vrot.slane %v424_v23, 4 }
  0xe5   : > { %v444_v8 = vadd.f32 %v443_v55, %v420_v50  ;;  %v450_v60 = vadd.f32 %v449_v56, %v421_v14  ;;  %v456_v9 = vadd.f32 %v455_v5, %v422_v37  ;;  %v462_v61 = vadd.f32 %v461_v57, %v423_v51 }
  0xe6   : > { %v427_v10 = vrot.slane %v426_v6, 2  ;;  %v433_v0 = vrot.slane %v432_v58, 2  ;;  %v439_v11 = vrot.slane %v438_v7, 2  ;;  %v468_v1 = vadd.f32 %v467_v59, %v424_v23 }
  0xe7   : > { %v445_v12 = vrot.slane %v444_v8, 2  ;;  %v451_v2 = vrot.slane %v450_v60, 2  ;;  %v457_v3 = vrot.slane %v456_v9, 2  ;;  %v463_v15 = vrot.slane %v462_v61, 2 }
  0xe8   : > { %v428_v17 = vadd.f32 %v427_v10, %v426_v6  ;;  %v434_v18 = vadd.f32 %v433_v0, %v432_v58  ;;  %v440_v19 = vadd.f32 %v439_v11, %v438_v7  ;;  %v469_v20 = vrot.slane %v468_v1, 2 }
  0xe9   : > { %v446_v36 = vadd.f32 %v445_v12, %v444_v8  ;;  %v452_v21 = vadd.f32 %v451_v2, %v450_v60  ;;  %v458_v22 = vadd.f32 %v457_v3, %v456_v9  ;;  %v464_v27 = vadd.f32 %v463_v15, %v462_v61 }
  0xea   : > { %v429_v50 = vrot.slane %v428_v17, 1  ;;  %v435_v14 = vrot.slane %v434_v18, 1  ;;  %v441_v37 = vrot.slane %v440_v19, 1  ;;  %v470_v51 = vadd.f32 %v469_v20, %v468_v1 }
  0xeb   : > { %v447_v52 = vrot.slane %v446_v36, 1  ;;  %v453_v53 = vrot.slane %v452_v21, 1  ;;  %v459_v54 = vrot.slane %v458_v22, 1  ;;  %v465_v23 = vrot.slane %v464_v27, 1 }
  0xec   : > { %v430_v55 = vadd.f32 %v429_v50, %v428_v17  ;;  %v436_v56 = vadd.f32 %v435_v14, %v434_v18  ;;  %v442_v5 = vadd.f32 %v441_v37, %v440_v19  ;;  %v471_v57 = vrot.slane %v470_v51, 1 }
  0xed   : > { %v448_v6 = vadd.f32 %v447_v52, %v446_v36  ;;  %v454_v58 = vadd.f32 %v453_v53, %v452_v21  ;;  %v460_v7 = vadd.f32 %v459_v54, %v458_v22  ;;  %v466_v59 = vadd.f32 %v465_v23, %v464_v27 }
  0xee   : > { %v472_v8 = vadd.f32 %v471_v57, %v470_v51  ;;  %v474_v60 = vadd.f32 %v1645_v32, %v430_v55  ;;  %v475_v9 = vadd.f32 %v1645_v32, %v436_v56  ;;  %v476_v61 = vadd.f32 %v1645_v32, %v442_v5 }
  0xef   : > { %v477_v10 = vadd.f32 %v1645_v32, %v448_v6  ;;  %v478_v0 = vadd.f32 %v1645_v32, %v454_v58  ;;  %v479_v11 = vadd.f32 %v1645_v32, %v460_v7  ;;  %v480_v1 = vadd.f32 %v1645_v32, %v466_v59 }
  0xf0   : > { %v481_v12 = vadd.f32 %v1645_v32, %v472_v8  ;;  %v482_v2 = vmax.f32 %v474_v60, 0.0  ;;  %v483_v3 = vmax.f32 %v475_v9, 0.0  ;;  %v484_v15 = vmax.f32 %v476_v61, 0.0 }
  0xf1   : > { %v485_v17 = vmax.f32 %v477_v10, 0.0  ;;  %v486_v18 = vmax.f32 %v478_v0, 0.0  ;;  %v487_v19 = vmax.f32 %v479_v11, 0.0  ;;  %v488_v20 = vmax.f32 %v480_v1, 0.0 }
  0xf2   : > { %v489_v36 = vmax.f32 %v481_v12, 0.0  ;;  %v491_v21 = vmul.f32 %v1670_v49, %v482_v2  ;;  %v492_v22 = vmul.f32 %v1670_v49, %v483_v3  ;;  %v493_v27 = vmul.f32 %v1670_v49, %v484_v15 }
  0xf3   : > { %v494_v50 = vmul.f32 %v1670_v49, %v485_v17  ;;  %v495_v14 = vmul.f32 %v1670_v49, %v486_v18  ;;  %v496_v32 = vmul.f32 %v1670_v49, %v487_v19  ;;  %v497_v37 = vmul.f32 %v1670_v49, %v488_v20 }
  0xf4   : > { %v498_v51 = vmul.f32 %v1670_v49, %v489_v36  ;;  %v499_v52 = vadd.f32 %v491_v21, %v1648_v44  ;;  %v500_v53 = vadd.f32 %v492_v22, %v1651_v33  ;;  %v501_v54 = vadd.f32 %v493_v27, %v1654_v34 }
  0xf5   : > { %v502_v23 = vadd.f32 %v494_v50, %v1657_v45  ;;  %v503_v55 = vadd.f32 %v495_v14, %v1660_v46  ;;  %v504_v56 = vadd.f32 %v496_v32, %v1663_v47  ;;  %v505_v5 = vadd.f32 %v497_v37, %v1666_v48 }
  0xf6   : > { %v506_v57 = vadd.f32 %v498_v51, %v1668_v16  ;;  %v594_v6 = vadd.f32 %v1521_v38, %v499_v52  ;;  %v595_v49 = vadd.f32 %v1524_v39, %v500_v53  ;;  %v596_v44 = vadd.f32 %v1527_v13, %v501_v54 }
  0xf7   : > { %v597_v33 = vadd.f32 %v1530_v40, %v502_v23  ;;  %v598_v34 = vadd.f32 %v1533_v41, %v503_v55  ;;  %v599_v45 = vadd.f32 %v1536_v42, %v504_v56  ;;  %v600_v46 = vadd.f32 %v1539_v43, %v505_v5 }
  0xf8   : > { %v601_v47 = vadd.f32 %v1566_v4, %v506_v57  ;;  %v689_v48 = vadd.f32 %v1623_v28, %v594_v6  ;;  %v690_v16 = vadd.f32 %v1626_v24, %v595_v49  ;;  %v691_v38 = vadd.f32 %v1629_v29, %v596_v44 }
  0xf9   : > { %v688_v39 = vmul.f32 %v1594_v25, %v679_v26  ;;  %v692_v13 = vadd.f32 %v1632_v30, %v597_v33  ;;  %v693_v40 = vadd.f32 %v1635_v31, %v598_v34  ;;  %v694_v41 = vadd.f32 %v1638_v35, %v599_v45 }
  0xfa   : > { %v695_v42 = vadd.f32 %v1641_v63, %v600_v46  ;;  %v1013_v43 = vmul.f32 -1.442695, %v689_v48  ;;  %v1014_v4 = vmul.f32 -1.442695, %v690_v16  ;;  %v1015_v58 = vmul.f32 -1.442695, %v691_v38 }
  0xfb   : > { %v696_v28 = vadd.f32 %v688_v39, %v601_v47  ;;  %v1016_v7 = vmul.f32 -1.442695, %v692_v13  ;;  %v1017_v24 = vmul.f32 -1.442695, %v693_v40  ;;  %v1018_v29 = vmul.f32 -1.442695, %v694_v41 }
  0xfc   : > { %1114 = vpow2.f32 %v1013_v43  ;;  %v1019_v62 = vmul.f32 -1.442695, %v695_v42 }
  0xfd   : > { %1116 = vpow2.f32 %v1014_v4  ;;  %v1020_v25 = vmul.f32 -1.442695, %v696_v28 }
  0xfe   : > { %1118 = vpow2.f32 %v1015_v58 }
  0xff   : > { %1120 = vpow2.f32 %v1016_v7 }
 0x100   : > { %1122 = vpow2.f32 %v1017_v24 }
 0x101   : > { %1124 = vpow2.f32 %v1018_v29 }
 0x102   : > { %v1115_v26 = vpop.eup %1114  ;;  %1126 = vpow2.f32 %v1019_v62 }
 0x103   : > { %v1117_v30 = vpop.eup %1116  ;;  %1128 = vpow2.f32 %v1020_v25  ;;  %v1722_v31 = vadd.f32 1.0, %v1115_v26 }
 0x104   : > { %v1119_v35 = vpop.eup %1118  ;;  %v1724_v63 = vadd.f32 1.0, %v1117_v30 }
 0x105   : > { %v1121_v59 = vpop.eup %1120  ;;  %v1726_v8 = vadd.f32 1.0, %v1119_v35  ;;  %1130 = vrcp.f32 %v1722_v31  ;;  %v740_v0 = vand.u32 2147483648, %v1722_v31  ;;  %vm734_vm0 = vweird.f32 %v1722_v31 }
 0x106   : > { %v1123_v60 = vpop.eup %1122  ;;  %v1729_v9 = vadd.f32 1.0, %v1121_v59  ;;  %1132 = vrcp.f32 %v1724_v63  ;;  %v755_v12 = vand.u32 2147483648, %v1724_v63  ;;  %v738_v17 = vand.u32 2147483647, %v1722_v31 }
 0x107   : > { %v1125_v61 = vpop.eup %1124  ;;  %v1732_v10 = vadd.f32 1.0, %v1123_v60  ;;  %1134 = vrcp.f32 %v1726_v8  ;;  %v1750_v19 = vor.u32 1.1754944e-38, %v740_v0  ;;  %vm749_vm1 = vweird.f32 %v1724_v63 }
 0x108   : > { %v1127_v11 = vpop.eup %1126  ;;  %v1736_v1 = vadd.f32 1.0, %v1125_v61  ;;  %1136 = vrcp.f32 %v1729_v9  ;;  %v753_v20 = vand.u32 2147483647, %v1724_v63  ;;  %v770_v36 = vand.u32 2147483648, %v1726_v8 }
 0x109   : > { %v1129_v2 = vpop.eup %1128  ;;  %v1740_v3 = vadd.f32 1.0, %v1127_v11  ;;  %1138 = vrcp.f32 %v1732_v10  ;;  %v1759_v27 = vor.u32 1.1754944e-38, %v755_v12  ;;  %vm764_vm2 = vweird.f32 %v1726_v8 }
 0x10a   : > { %v1743_v15 = vadd.f32 1.0, %v1129_v2  ;;  %1140 = vrcp.f32 %v1736_v1  ;;  %v768_v50 = vand.u32 2147483647, %v1726_v8  ;;  %vm779_vm3 = vweird.f32 %v1729_v9 }
 0x10b   : > { %v1748_v18 = vpop.eup %1130  ;;  %1142 = vrcp.f32 %v1740_v3  ;;  %v783_v37 = vand.u32 2147483647, %v1729_v9  ;;  %vm1776_vm5 = vcmp.eq.f32.partialorder %v738_v17, 8.507059e+37  ;;  %v771_v56 = vor.u32 1.1754944e-38, %v770_v36 }
 0x10c   : > { %v1755_v21 = vpop.eup %1132  ;;  %v730_v22 = vmul.f32 %v1748_v18, %v1722_v31  ;;  %1144 = vrcp.f32 %v1743_v15  ;;  %vm735_vm4 = vweird.f32 %v1748_v18  ;;  %vm1786_vm7 = vcmp.eq.f32.partialorder %v753_v20, 8.507059e+37 }
 0x10d   : > { %v1763_v14 = vpop.eup %1134  ;;  %v745_v32 = vmul.f32 %v1755_v21, %v1724_v63  ;;  %vm750_vm6 = vweird.f32 %v1755_v21  ;;  %vm1793_vm9 = vcmp.eq.f32.partialorder %v768_v50, 8.507059e+37  ;;  %vm1797_vm10 = vcmp.eq.f32.partialorder %v783_v37, 8.507059e+37  ;;  %vm1812_vm11 = vmor %vm734_vm0, %vm735_vm4 }
 0x10e   : > { %v1770_v51 = vpop.eup %1136  ;;  %v731_v52 = vsub.f32 1.0, %v730_v22  ;;  %v760_v53 = vmul.f32 %v1763_v14, %v1726_v8  ;;  %vm765_vm8 = vweird.f32 %v1763_v14  ;;  %v785_v48 = vand.u32 2147483648, %v1729_v9  ;;  %vm1827_vm13 = vmor %vm749_vm1, %vm750_vm6 }
 0x10f   : > { %v1139_v54 = vpop.eup %1138  ;;  %v746_v55 = vsub.f32 1.0, %v745_v32  ;;  %v775_v5 = vmul.f32 %v1770_v51, %v1729_v9  ;;  %v798_v16 = vand.u32 2147483647, %v1732_v10  ;;  %v800_v40 = vand.u32 2147483648, %v1732_v10  ;;  %vm1840_vm0 = vmor %vm764_vm2, %vm765_vm8 }
 0x110   : > { %v1783_v57 = vpop.eup %1140  ;;  %v732_v6 = vmul.f32 %v1748_v18, %v731_v52  ;;  %v761_v44 = vsub.f32 1.0, %v760_v53  ;;  %v790_v33 = vmul.f32 %v1139_v54, %v1732_v10  ;;  %vm780_vm12 = vweird.f32 %v1770_v51 }
 0x111   : > { %v747_v34 = vmul.f32 %v1755_v21, %v746_v55  ;;  %v776_v46 = vsub.f32 1.0, %v775_v5  ;;  %v1806_v41 = vpop.eup %1142  ;;  %v805_v58 = vmul.f32 %v1783_v57, %v1736_v1  ;;  %vm794_vm14 = vweird.f32 %v1732_v10  ;;  %vm1850_vm1 = vmor %vm779_vm3, %vm780_vm12  ;;  %v1147_v55 = vld [vmem:[%s1440_s19 + $0x8] sm:$0xff]  ;;  %v1148_v5 = vld [vmem:[%s1440_s19 + $0x10] sm:$0xff] }
 0x112   : > { %v733_v38 = vadd.f32 %v1748_v18, %v732_v6  ;;  %v762_v39 = vmul.f32 %v1763_v14, %v761_v44  ;;  %v791_v13 = vsub.f32 1.0, %v790_v33  ;;  %v1821_v28 = vpop.eup %1144  ;;  %vm795_vm15 = vweird.f32 %v1139_v54  ;;  %v1149_v33 = vld [vmem:[%s1440_s19 + $0x18] sm:$0xff] }
 0x113   : > { %v748_v43 = vadd.f32 %v1755_v21, %v747_v34  ;;  %v777_v4 = vmul.f32 %v1770_v51, %v776_v46  ;;  %v786_v30 = vor.u32 1.1754944e-38, %v785_v48  ;;  %v806_v31 = vsub.f32 1.0, %v805_v58  ;;  %vm796_vm2 = vmor %vm794_vm14, %vm795_vm15  ;;  %v1150_v46 = vld [vmem:[%s1440_s19 + $0x20] sm:$0xff] }
 0x114   : > { %v763_v24 = vadd.f32 %v1763_v14, %v762_v39  ;;  %v792_v29 = vmul.f32 %v1139_v54, %v791_v13  ;;  %v737_v62 = vsel %vm1812_vm11, %v1748_v18, %v733_v38  ;;  %vm1854_vm4 = vcmp.eq.f32.partialorder %v798_v16, 8.507059e+37  ;;  %v1151_v38 = vld [vmem:[%s1440_s19 + $0x28] sm:$0xff] }
 0x115   : > { %v778_v26 = vadd.f32 %v1770_v51, %v777_v4  ;;  %v752_v35 = vsel %vm1827_vm13, %v1755_v21, %v748_v43  ;;  %v801_v60 = vor.u32 1.1754944e-38, %v800_v40  ;;  %v807_v9 = vmul.f32 %v1783_v57, %v806_v31  ;;  %v1153_v43 = vld [vmem:[%s1440_s19 + $0x38] sm:$0xff] }
 0x116   : > { %v793_v59 = vadd.f32 %v1139_v54, %v792_v29  ;;  %v767_v61 = vsel %vm1840_vm0, %v1763_v14, %v763_v24  ;;  %vm810_vm3 = vweird.f32 %v1783_v57  ;;  %v742_v0 = vsel %vm1776_vm5, %v1750_v19, %v737_v62 }
 0x117   : > { %v782_v10 = vsel %vm1850_vm1, %v1770_v51, %v778_v26  ;;  %v813_v12 = vand.u32 2147483647, %v1736_v1  ;;  %v815_v2 = vand.u32 2147483648, %v1736_v1  ;;  %v757_v17 = vsel %vm1786_vm7, %v1759_v27, %v752_v35 }
 0x118   : > { %v797_v11 = vsel %vm796_vm2, %v1139_v54, %v793_v59  ;;  %v808_v18 = vadd.f32 %v1783_v57, %v807_v9  ;;  %vm809_vm6 = vweird.f32 %v1736_v1  ;;  %v820_v20 = vmul.f32 %v1806_v41, %v1740_v3  ;;  %v1146_v54 = vld [vmem:[%s1440_s19] sm:$0xff] }
 0x119   : > { %v772_v19 = vsel %vm1793_vm9, %v771_v56, %v767_v61  ;;  %v787_v36 = vsel %vm1797_vm10, %v786_v30, %v782_v10  ;;  %v802_v21 = vsel %vm1854_vm4, %v801_v60, %v797_v11  ;;  %vm811_vm5 = vmor %vm809_vm6, %vm810_vm3  ;;  %vm824_vm7 = vweird.f32 %v1740_v3 }
 0x11a   : > { %v812_v22 = vsel %vm811_vm5, %v1783_v57, %v808_v18  ;;  %v816_v1 = vor.u32 1.1754944e-38, %v815_v2  ;;  %v821_v27 = vsub.f32 1.0, %v820_v20  ;;  %v835_v50 = vmul.f32 %v1821_v28, %v1743_v15 }
 0x11b   : > { %vm814_vm8 = vcmp.eq.f32.partialorder %v813_v12, 8.507059e+37  ;;  %vm825_vm9 = vweird.f32 %v1806_v41  ;;  %v828_v14 = vand.u32 2147483647, %v1740_v3  ;;  %v830_v32 = vand.u32 2147483648, %v1740_v3 }
 0x11c   : > { %v817_v37 = vsel %vm814_vm8, %v816_v1, %v812_v22  ;;  %v822_v51 = vmul.f32 %v1806_v41, %v821_v27  ;;  %v836_v52 = vsub.f32 1.0, %v835_v50  ;;  %vm840_vm10 = vweird.f32 %v1821_v28  ;;  %vm826_vm11 = vmor %vm824_vm7, %vm825_vm9 }
 0x11d   : > { %v845_v53 = vand.u32 2147483648, %v1743_v15  ;;  %v849_v23 = vmul.f32 %v1146_v54, %v742_v0  ;;  %v850_v56 = vmul.f32 %v1147_v55, %v757_v17  ;;  %v851_v57 = vmul.f32 %v1148_v5, %v772_v19 }
 0x11e   : > { %v823_v6 = vadd.f32 %v1806_v41, %v822_v51  ;;  %v837_v49 = vmul.f32 %v1821_v28, %v836_v52  ;;  %v843_v44 = vand.u32 2147483647, %v1743_v15  ;;  %v852_v34 = vmul.f32 %v1149_v33, %v787_v36 }
 0x11f   : > { %vm829_vm12 = vcmp.eq.f32.partialorder %v828_v14, 8.507059e+37  ;;  %v831_v45 = vor.u32 1.1754944e-38, %v830_v32  ;;  %v853_v47 = vmul.f32 %v1150_v46, %v802_v21  ;;  %857 = vst [vmem:[%s288_s7] sm:$0xff] %v849_v23  ;;  %vm839_vm13 = vweird.f32 %v1743_v15 }
 0x120   : > { %v827_v48 = vsel %vm826_vm11, %v1806_v41, %v823_v6  ;;  %v838_v16 = vadd.f32 %v1821_v28, %v837_v49  ;;  %v854_v39 = vmul.f32 %v1151_v38, %v817_v37  ;;  %858 = vst [vmem:[%s288_s7 + $0x8] sm:$0xff] %v850_v56  ;;  %vm841_vm14 = vmor %vm839_vm13, %vm840_vm10  ;;  %v846_v13 = vor.u32 1.1754944e-38, %v845_v53  ;;  %v1152_v41 = vld [vmem:[%s1440_s19 + $0x30] sm:$0xff] }
 0x121   : > { %v832_v3 = vsel %vm829_vm12, %v831_v45, %v827_v48  ;;  %859 = vst [vmem:[%s288_s7 + $0x10] sm:$0xff] %v851_v57  ;;  %vm844_vm15 = vcmp.eq.f32.partialorder %v843_v44, 8.507059e+37 }
 0x122   : > { %v842_v40 = vsel %vm841_vm14, %v1821_v28, %v838_v16  ;;  %v855_v42 = vmul.f32 %v1152_v41, %v832_v3  ;;  %860 = vst [vmem:[%s288_s7 + $0x18] sm:$0xff] %v852_v34 }
 0x123   : > { %v847_v15 = vsel %vm844_vm15, %v846_v13, %v842_v40  ;;  %861 = vst [vmem:[%s288_s7 + $0x20] sm:$0xff] %v853_v47 }
 0x124   : > { %v856_v4 = vmul.f32 %v1153_v43, %v847_v15  ;;  %862 = vst [vmem:[%s288_s7 + $0x28] sm:$0xff] %v854_v39 }
 0x125   : > { %863 = vst [vmem:[%s288_s7 + $0x30] sm:$0xff] %v855_v42 }
 0x126   : > { %864 = vst [vmem:[%s288_s7 + $0x38] sm:$0xff] %v856_v4 }
 0x127   : > { %1241 = shalt.err (!%p1238_p0)
}
 0x128   : > { %1038 = dma.vmem_to_hbm [thread:$0]  (%p1414_p2), %s882_s9, 1024, %s884_s15, %s866_s10  }
 0x129 PF: > { %s895_s13 = sand.u32 1, %s1284_s20   ;;  %p1052_p4 = pnand %p995_p8, %p1387_p5 }
 0x12a   : > { %s896_s4 = scalar_lea.sflag [#allocation5], %s895_s13 }
 0x12b   : > { %p1053_p6 = pneg %p1052_p4 }
 0x12d   : > { %1279 = dma.done.wait (%p1053_p6), %s896_s4, 1024  }
 0x12e   : > { %1281 = vsyncadd (%p1053_p6), %s896_s4, 4294966272  ;;  %s24_s25 = sadd.s32 1, %s1304_s25   ;;  %s1987_s20 = smov %s1288_s21 }
 0x12f   : > { %p21_p9 = scmp.ge.s32.totalorder %s24_s25, 4   ;;  %s1988_s21 = smov %s1292_s22 }
 0x130   : > { %s1989_s22 = smov %s1424_s26  ;;  %s1990_s23 = smov %s1300_s24 }
 0x131   : > { %s1991_s24 = smov %s1993_s14  ;;  %23 = sbr.rel (!%p21_p9) target bundleno = 10 (0xa), region = 97 }
 0x136   :  { %902 = vsyncpa [#allocation4], 1 }
 0x137   :  { %904 = vsyncpa [#allocation4 + $0x1], 1 }
 0x138   :  { %905 = vsyncpa [#allocation5], 1 }
 0x139   :  { %907 = vsyncpa [#allocation5 + $0x1], 1 }
 0x13a   :  { %908 = vsyncpa [#allocation6], 1 }
 0x13b   :  { %910 = vsyncpa [#allocation6 + $0x1], 1 }
 0x13c   :  { %911 = vsyncpa [#allocation9], 1 }

</bundles_post_ra>
